<compile_context>
chip_gen: v7x
topology: tpu7x:2x2x1
jax: 0.10.0
libtpu: 0.0.40
codegen_flags: <defaults>
</compile_context>

<pallas_src>
import jax
import jax.numpy as jnp
from jax.experimental import pallas as pl
from jax.experimental.pallas import tpu as pltpu

LANE = 128
SUBLANE = 8


def _round_up(n, m):
    return ((n + m - 1) // m) * m


def dqn_kernel(x_ref, w1_ref, b1_ref, w2_ref, b2_ref, w3_ref, b3_ref, o_ref):
    """One batch tile: relu(relu(x@W1+b1)@W2+b2)@W3+b3, f32 accumulation."""
    mm_dtype = w1_ref.dtype  # bf16 (fast path) or f32
    x = x_ref[...].astype(mm_dtype)

    # fc1 + relu (bias add / relu in f32 — v5e VPU has no bf16 path)
    h1 = jnp.dot(x, w1_ref[...], preferred_element_type=jnp.float32)
    h1 = jnp.maximum(h1 + b1_ref[...], 0.0)

    # fc2 + relu
    h2 = jnp.dot(h1.astype(mm_dtype), w2_ref[...],
                 preferred_element_type=jnp.float32)
    h2 = jnp.maximum(h2 + b2_ref[...], 0.0)

    # fc3 (no activation); narrow masked store of the real out_dim columns
    o_ref[...] = (jnp.dot(h2.astype(mm_dtype), w3_ref[...],
                          preferred_element_type=jnp.float32) + b3_ref[...])


def dqn_forward(x, params, *, tile_b=2048, use_bf16=True):
    """x: (B, input_dim), f32 or bf16. params: weights (in,out), biases (1,out)."""
    w1, b1, w2, b2, w3, b3 = (params["w1"], params["b1"], params["w2"],
                              params["b2"], params["w3"], params["b3"])
    B, d_in = x.shape
    h1_dim = w1.shape[1]
    h2_dim = w2.shape[1]
    out_dim = w3.shape[1]

    # Batch tiling: multiple of 8 sublanes, capped at 8192 (VMEM budget on
    # v5e's 16 MiB / v7x's 32 MiB default scoped VMEM), never larger than the
    # (sublane-rounded) batch.  Partial last block handled by Pallas masking.
    tile_b = max(SUBLANE, min(int(tile_b), 8192))
    tile_b = _round_up(tile_b, SUBLANE)
    tile_b = min(tile_b, _round_up(B, SUBLANE))
    # v7x has 2 TensorCores sharing the "parallel" batch axis: keep the grid
    # at >= 4 steps (>= 2 pipelined steps per TC) when the batch allows it.
    if B >= 4 * SUBLANE:
        while tile_b > SUBLANE and pl.cdiv(B, tile_b) < 4:
            tile_b = _round_up(max(tile_b // 2, SUBLANE), SUBLANE)

    grid = (pl.cdiv(B, tile_b),)

    mm_dtype = jnp.bfloat16 if use_bf16 else jnp.float32
    w1m = w1.astype(mm_dtype)
    w2m = w2.astype(mm_dtype)
    w3m = w3.astype(mm_dtype)
    b1f = b1.astype(jnp.float32)
    b2f = b2.astype(jnp.float32)
    b3f = b3.astype(jnp.float32)

    # x / out stream per batch tile; weights & biases use constant index_maps
    # so they are DMA'd once and stay resident in VMEM across all tiles.
    x_spec = pl.BlockSpec((tile_b, d_in), lambda i: (i, 0))
    out_spec = pl.BlockSpec((tile_b, out_dim), lambda i: (i, 0))

    def const_spec(shape):
        return pl.BlockSpec(shape, lambda i: (0, 0))

    flops = 2 * B * (d_in * h1_dim + h1_dim * h2_dim + h2_dim * out_dim)
    bytes_accessed = (
        x.size * x.dtype.itemsize
        + B * out_dim * 4
        + sum(a.size * a.dtype.itemsize
              for a in (w1m, b1f, w2m, b2f, w3m, b3f))
    )

    return pl.pallas_call(
        dqn_kernel,
        out_shape=jax.ShapeDtypeStruct((B, out_dim), jnp.float32),
        grid=grid,
        in_specs=[
            x_spec,
            const_spec(w1m.shape), const_spec(b1f.shape),
            const_spec(w2m.shape), const_spec(b2f.shape),
            const_spec(w3m.shape), const_spec(b3f.shape),
        ],
        out_specs=out_spec,
        compiler_params=pltpu.CompilerParams(
            dimension_semantics=("parallel",)),
        cost_estimate=pl.CostEstimate(
            flops=flops, transcendentals=0, bytes_accessed=bytes_accessed),
    )(x, w1m, b1f, w2m, b2f, w3m, b3f)


def init_params(key, input_dim, output_dim):
    """Deterministic init mirroring the layer shapes of the PyTorch DQN."""
    k1, k2, k3, k4, k5, k6 = jax.random.split(key, 6)

    def lin(kw, kb, fan_in, fan_out):
        bound = 1.0 / jnp.sqrt(fan_in)
        w = jax.random.uniform(kw, (fan_in, fan_out), jnp.float32, -bound, bound)
        b = jax.random.uniform(kb, (1, fan_out), jnp.float32, -bound, bound)
        return w, b

    w1, b1 = lin(k1, k2, input_dim, 128)
    w2, b2 = lin(k3, k4, 128, 64)
    w3, b3 = lin(k5, k6, 64, output_dim)
    return {"w1": w1, "b1": b1, "w2": w2, "b2": b2, "w3": w3, "b3": b3}


def dqn_reference(x, p, mm_dtype=jnp.float32):
    """Pure-JAX reference mirroring the kernel's precision policy."""
    w1 = p["w1"].astype(mm_dtype)
    w2 = p["w2"].astype(mm_dtype)
    w3 = p["w3"].astype(mm_dtype)
    h1 = jnp.dot(x.astype(mm_dtype), w1, preferred_element_type=jnp.float32)
    h1 = jnp.maximum(h1 + p["b1"], 0.0)
    h2 = jnp.dot(h1.astype(mm_dtype), w2, preferred_element_type=jnp.float32)
    h2 = jnp.maximum(h2 + p["b2"], 0.0)
    return jnp.dot(h2.astype(mm_dtype), w3,
                   preferred_element_type=jnp.float32) + p["b3"]


if __name__ == "__main__":
    key = jax.random.PRNGKey(0)
    k_param, k_x1, k_x2 = jax.random.split(key, 3)

    input_dim, output_dim = 16, 4
    params = init_params(k_param, input_dim, output_dim)

    # Small batch (single tile), exact-f32 path vs f32 reference.
    x_small = jax.random.normal(k_x1, (8, input_dim), jnp.float32)
    out_f32 = jax.block_until_ready(dqn_forward(x_small, params, use_bf16=False))
    ref_f32 = dqn_reference(x_small, params, jnp.float32)
    assert out_f32.shape == (8, output_dim)
    assert jnp.allclose(out_f32, ref_f32, atol=1e-5, rtol=1e-5)

    # bf16-matmul fast path vs a matching bf16-operand / f32-accumulate reference.
    out_bf16 = jax.block_until_ready(dqn_forward(x_small, params, use_bf16=True))
    ref_bf16 = dqn_reference(x_small, params, jnp.bfloat16)
    assert jnp.allclose(out_bf16, ref_bf16, atol=2e-3, rtol=2e-3)

    # Larger, non-divisible batch: multi-step grid + masked partial last block,
    # no wrapper-side pad/slice.
    x_big = jax.random.normal(k_x2, (300, input_dim), jnp.float32)
    out_big = jax.block_until_ready(dqn_forward(x_big, params, use_bf16=True))
    ref_big = dqn_reference(x_big, params, jnp.bfloat16)
    assert out_big.shape == (300, output_dim)
    assert jnp.allclose(out_big, ref_big, atol=2e-3, rtol=2e-3)

    # bf16-x fast path: caller streams bf16 activations (halves x HBM traffic).
    x_bf = x_big.astype(jnp.bfloat16)
    out_xbf = jax.block_until_ready(dqn_forward(x_bf, params, use_bf16=True))
    ref_xbf = dqn_reference(x_bf, params, jnp.bfloat16)
    assert jnp.allclose(out_xbf, ref_xbf, atol=2e-3, rtol=2e-3)

    print("KERNEL_OK")
</pallas_src>

<mosaic_0001>
module attributes {stable_mosaic.version = 11 : i64} {
  func.func @dqn_kernel(%arg0: i32, %arg1: memref<8x16xf32, #tpu.memory_space<vmem>>, %arg2: memref<16x128xf32, #tpu.memory_space<vmem>>, %arg3: memref<1x128xf32, #tpu.memory_space<vmem>>, %arg4: memref<128x64xf32, #tpu.memory_space<vmem>>, %arg5: memref<1x64xf32, #tpu.memory_space<vmem>>, %arg6: memref<64x4xf32, #tpu.memory_space<vmem>>, %arg7: memref<1x4xf32, #tpu.memory_space<vmem>>, %arg8: memref<8x4xf32, #tpu.memory_space<vmem>>) attributes {dimension_semantics = [#tpu.dimension_semantics<parallel>], iteration_bounds = array<i64: 1>, scalar_prefetch = 0 : i64, scratch_operands = 0 : i64, tpu.core_type = #tpu.core_type<tc>, window_params = [{transform_indices = @transform_0, window_bounds = array<i64: 8, 16>}, {pipeline_mode = #tpu.pipeline_mode<synchronous>, transform_indices = @transform_1, window_bounds = array<i64: 16, 128>}, {pipeline_mode = #tpu.pipeline_mode<synchronous>, transform_indices = @transform_2, window_bounds = array<i64: 1, 128>}, {pipeline_mode = #tpu.pipeline_mode<synchronous>, transform_indices = @transform_3, window_bounds = array<i64: 128, 64>}, {pipeline_mode = #tpu.pipeline_mode<synchronous>, transform_indices = @transform_4, window_bounds = array<i64: 1, 64>}, {pipeline_mode = #tpu.pipeline_mode<synchronous>, transform_indices = @transform_5, window_bounds = array<i64: 64, 4>}, {pipeline_mode = #tpu.pipeline_mode<synchronous>, transform_indices = @transform_6, window_bounds = array<i64: 1, 4>}, {transform_indices = @transform_7, window_bounds = array<i64: 8, 4>}]} {
    %c0 = arith.constant 0 : index
    %c0_0 = arith.constant 0 : index
    %0 = vector.load %arg1[%c0, %c0_0] : memref<8x16xf32, #tpu.memory_space<vmem>>, vector<8x16xf32>
    %c0_1 = arith.constant 0 : index
    %c0_2 = arith.constant 0 : index
    %1 = vector.load %arg2[%c0_1, %c0_2] : memref<16x128xf32, #tpu.memory_space<vmem>>, vector<16x128xf32>
    %cst = arith.constant dense<0.000000e+00> : vector<8x128xf32>
    %2 = tpu.matmul %0, %1, %cst {dimension_numbers = #tpu.dot_dimension_numbers<[1], [0], [0], [1], [0, 0, 1, 1], [], []>} : vector<8x16xf32>, vector<16x128xf32>, vector<8x128xf32> -> vector<8x128xf32>
    %c0_3 = arith.constant 0 : index
    %c0_4 = arith.constant 0 : index
    %3 = vector.load %arg3[%c0_3, %c0_4] : memref<1x128xf32, #tpu.memory_space<vmem>>, vector<1x128xf32>
    %4 = vector.broadcast %3 : vector<1x128xf32> to vector<8x128xf32>
    %5 = arith.addf %2, %4 : vector<8x128xf32>
    %cst_5 = arith.constant 0.000000e+00 : f32
    %6 = vector.broadcast %cst_5 : f32 to vector<8x128xf32>
    %7 = arith.maximumf %5, %6 : vector<8x128xf32>
    %c0_6 = arith.constant 0 : index
    %c0_7 = arith.constant 0 : index
    %8 = vector.load %arg4[%c0_6, %c0_7] : memref<128x64xf32, #tpu.memory_space<vmem>>, vector<128x64xf32>
    %cst_8 = arith.constant dense<0.000000e+00> : vector<8x64xf32>
    %9 = tpu.matmul %7, %8, %cst_8 {dimension_numbers = #tpu.dot_dimension_numbers<[1], [0], [0], [1], [0, 0, 1, 1], [], []>} : vector<8x128xf32>, vector<128x64xf32>, vector<8x64xf32> -> vector<8x64xf32>
    %c0_9 = arith.constant 0 : index
    %c0_10 = arith.constant 0 : index
    %10 = vector.load %arg5[%c0_9, %c0_10] : memref<1x64xf32, #tpu.memory_space<vmem>>, vector<1x64xf32>
    %11 = vector.broadcast %10 : vector<1x64xf32> to vector<8x64xf32>
    %12 = arith.addf %9, %11 : vector<8x64xf32>
    %cst_11 = arith.constant 0.000000e+00 : f32
    %13 = vector.broadcast %cst_11 : f32 to vector<8x64xf32>
    %14 = arith.maximumf %12, %13 : vector<8x64xf32>
    %c0_12 = arith.constant 0 : index
    %c0_13 = arith.constant 0 : index
    %15 = vector.load %arg6[%c0_12, %c0_13] : memref<64x4xf32, #tpu.memory_space<vmem>>, vector<64x4xf32>
    %cst_14 = arith.constant dense<0.000000e+00> : vector<8x4xf32>
    %16 = tpu.matmul %14, %15, %cst_14 {dimension_numbers = #tpu.dot_dimension_numbers<[1], [0], [0], [1], [0, 0, 1, 1], [], []>} : vector<8x64xf32>, vector<64x4xf32>, vector<8x4xf32> -> vector<8x4xf32>
    %c0_15 = arith.constant 0 : index
    %c0_16 = arith.constant 0 : index
    %17 = vector.load %arg7[%c0_15, %c0_16] : memref<1x4xf32, #tpu.memory_space<vmem>>, vector<1x4xf32>
    %18 = vector.broadcast %17 : vector<1x4xf32> to vector<8x4xf32>
    %19 = arith.addf %16, %18 : vector<8x4xf32>
    %c0_17 = arith.constant 0 : index
    %c0_18 = arith.constant 0 : index
    %20 = vector.load %arg8[%c0_17, %c0_18] : memref<8x4xf32, #tpu.memory_space<vmem>>, vector<8x4xf32>
    tpu.vector_store %arg8[%c0_17, %c0_18], %19 {strides = array<i32>} : memref<8x4xf32, #tpu.memory_space<vmem>>, vector<8x4xf32>,
    return
  }
  func.func @transform_0(%arg0: i32) -> (i32, i32) {
    %c0_i32 = arith.constant 0 : i32
    %c0_i32_0 = arith.constant 0 : i32
    return %arg0, %c0_i32 : i32, i32
  }
  func.func @transform_1(%arg0: i32) -> (i32, i32) {
    %c0_i32 = arith.constant 0 : i32
    %c0_i32_0 = arith.constant 0 : i32
    %c0_i32_1 = arith.constant 0 : i32
    return %c0_i32, %c0_i32_0 : i32, i32
  }
  func.func @transform_2(%arg0: i32) -> (i32, i32) {
    %c0_i32 = arith.constant 0 : i32
    %c0_i32_0 = arith.constant 0 : i32
    %c0_i32_1 = arith.constant 0 : i32
    return %c0_i32, %c0_i32_0 : i32, i32
  }
  func.func @transform_3(%arg0: i32) -> (i32, i32) {
    %c0_i32 = arith.constant 0 : i32
    %c0_i32_0 = arith.constant 0 : i32
    %c0_i32_1 = arith.constant 0 : i32
    return %c0_i32, %c0_i32_0 : i32, i32
  }
  func.func @transform_4(%arg0: i32) -> (i32, i32) {
    %c0_i32 = arith.constant 0 : i32
    %c0_i32_0 = arith.constant 0 : i32
    %c0_i32_1 = arith.constant 0 : i32
    return %c0_i32, %c0_i32_0 : i32, i32
  }
  func.func @transform_5(%arg0: i32) -> (i32, i32) {
    %c0_i32 = arith.constant 0 : i32
    %c0_i32_0 = arith.constant 0 : i32
    %c0_i32_1 = arith.constant 0 : i32
    return %c0_i32, %c0_i32_0 : i32, i32
  }
  func.func @transform_6(%arg0: i32) -> (i32, i32) {
    %c0_i32 = arith.constant 0 : i32
    %c0_i32_0 = arith.constant 0 : i32
    %c0_i32_1 = arith.constant 0 : i32
    return %c0_i32, %c0_i32_0 : i32, i32
  }
  func.func @transform_7(%arg0: i32) -> (i32, i32) {
    %c0_i32 = arith.constant 0 : i32
    %c0_i32_0 = arith.constant 0 : i32
    return %arg0, %c0_i32 : i32, i32
  }
}

</mosaic_0001>

<bundles_post_ra>
// kernel: tpu_custom_call.1
= control target key start
LH: loop header
LB: loop body
LE: loop exit
PB: predicated region body
PF: predicated region fallthrough
CT: control target
= control target key end

     0   :  { %v437_v0 = vmov 0.0|0.0   ;;  %vm438_vm0 = vmmov 0   ;;  %v439_v3 = vmov 0.0   ;;  %vm36_vm1 = vcmask 130048   ;;  %s589_s1 = inlined_call_operand.vmem [shape: f32[16,128], index: 1, kind: input, shape index: {}]   ;;  %s590_s3 = inlined_call_operand.vmem [shape: f32[128,64], index: 3, kind: input, shape index: {}]   ;;  %s591_s0 = inlined_call_operand.vmem [shape: f32[8,16], index: 0, kind: input, shape index: {}]   ;;  %s592_s5 = inlined_call_operand.vmem [shape: f32[64,4], index: 5, kind: input, shape index: {}]   ;;  %s593_s2 = inlined_call_operand.vmem [shape: f32[1,128], index: 2, kind: input, shape index: {}]   ;;  %s594_s4 = inlined_call_operand.vmem [shape: f32[1,64], index: 4, kind: input, shape index: {}]   ;;  %s595_s6 = inlined_call_operand.vmem [shape: f32[1,4], index: 6, kind: input, shape index: {}]   ;;  %s596_s7 = inlined_call_operand.vmem [shape: f32[8,4], index: 7, kind: output, shape index: {}]  }
   0x1   :  { %395 = vmatprep.subr.bf16.mxu0 %v437_v0  ;;  %v27_v1 = vld [vmem:[%s589_s1] sm:$0xff]  ;;  %v28_v2 = vld [vmem:[%s589_s1 + $0x8] sm:$0xff]  ;;  %338 = vmatprep.mubr.msk.f32.mxu0 %vm438_vm0, %v439_v3  ;;  %v113_v7 = vld [vmem:[%s590_s3 + $0x10] sm:$0xff]  ;;  %vm220_vm2 = vcmask 523264   ;;  %vm294_vm3 = vcmask 31744  }
   0x2   :  { %v396_v4 = vpack.c.bf16 %v28_v2, %v27_v1  ;;  %398 = vmatprep.subr.bf16.mxu1 %v437_v0  ;;  %v111_v5 = vld [vmem:[%s590_s3] sm:$0xff]  ;;  %v112_v6 = vld [vmem:[%s590_s3 + $0x8] sm:$0xff]  ;;  %373 = vmatprep.mubr.msk.f32.mxu1 %vm438_vm0, %v439_v3  ;;  %v114_v9 = vld [vmem:[%s590_s3 + $0x18] sm:$0xff] }
   0x3   :  { %v399_v8 = vpack.c.bf16 %v112_v6, %v111_v5  ;;  %v26_v10 = vld [vmem:[%s591_s0] sm:$0xff]  ;;  %v402_v11 = vpack.c.bf16 %v114_v9, %v113_v7  ;;  %v116_v13 = vld [vmem:[%s590_s3 + $0x28] sm:$0xff]  ;;  %v117_v15 = vld [vmem:[%s590_s3 + $0x30] sm:$0xff] }
   0x4   :  { %397 = vmatpush3.bf16.msra.mxu0 %v396_v4  ;;  %v115_v12 = vld [vmem:[%s590_s3 + $0x20] sm:$0xff]  ;;  %v118_v16 = vld [vmem:[%s590_s3 + $0x38] sm:$0xff]  ;;  %v120_v19 = vld [vmem:[%s590_s3 + $0x48] sm:$0xff] }
   0x5   :  { %400 = vmatpush3.bf16.msra.mxu1 %v399_v8  ;;  %422 = vmatprep.subr.bf16.mxu0 %v437_v0  ;;  %v405_v14 = vpack.c.bf16 %v116_v13, %v115_v12  ;;  %v408_v17 = vpack.c.bf16 %v118_v16, %v117_v15  ;;  %v119_v18 = vld [vmem:[%s590_s3 + $0x40] sm:$0xff]  ;;  %v121_v21 = vld [vmem:[%s590_s3 + $0x50] sm:$0xff]  ;;  %v122_v22 = vld [vmem:[%s590_s3 + $0x58] sm:$0xff] }
   0x6   :  { %401 = vmatprep.subr.bf16.mxu1 %v437_v0  ;;  %v411_v20 = vpack.c.bf16 %v120_v19, %v119_v18  ;;  %v414_v23 = vpack.c.bf16 %v122_v22, %v121_v21  ;;  %v123_v24 = vld [vmem:[%s590_s3 + $0x60] sm:$0xff]  ;;  %v124_v25 = vld [vmem:[%s590_s3 + $0x68] sm:$0xff]  ;;  %v125_v27 = vld [vmem:[%s590_s3 + $0x70] sm:$0xff] }
   0x7   :  { %339 = vmatmul.mubr.msk.f32.vlgmr.msra.gmra.mrb[0].mxu0 %vm36_vm1, %v26_v10  ;;  %v417_v26 = vpack.c.bf16 %v124_v25, %v123_v24  ;;  %v126_v28 = vld [vmem:[%s590_s3 + $0x78] sm:$0xff]  ;;  %v205_v30 = vld [vmem:[%s592_s5] sm:$0xff]  ;;  %v206_v31 = vld [vmem:[%s592_s5 + $0x8] sm:$0xff] }
   0x8   :  { %392 = vmatprep.mubr.msk.f32.mxu0 %vm438_vm0, %v439_v3  ;;  %v420_v29 = vpack.c.bf16 %v126_v28, %v125_v27  ;;  %v207_v32 = vld [vmem:[%s592_s5 + $0x10] sm:$0xff]  ;;  %v423_v33 = vpack.c.bf16 %v206_v31, %v205_v30  ;;  %v208_v34 = vld [vmem:[%s592_s5 + $0x18] sm:$0xff]  ;;  %v209_v36 = vld [vmem:[%s592_s5 + $0x20] sm:$0xff] }
   0x9   :  { %403 = vmatpush3.bf16.msra.mxu1 %v402_v11  ;;  %v426_v35 = vpack.c.bf16 %v208_v34, %v207_v32  ;;  %v210_v37 = vld [vmem:[%s592_s5 + $0x28] sm:$0xff]  ;;  %v300_v39 = vld [vmem:[%s593_s2] ss:$0 sm:$0xff]  ;;  %v211_v44 = vld [vmem:[%s592_s5 + $0x30] sm:$0xff] }
   0xa   :  { %404 = vmatprep.subr.bf16.mxu1 %v437_v0  ;;  %424 = vmatpush3.bf16.msra.mxu0 %v423_v33  ;;  %v429_v38 = vpack.c.bf16 %v210_v37, %v209_v36  ;;  %v212_v45 = vld [vmem:[%s592_s5 + $0x38] sm:$0xff]  ;;  %v302_v47 = vld [vmem:[%s594_s4] ss:$0 sm:$0xff] }
   0xb   :  { %425 = vmatprep.subr.bf16.mxu0 %v437_v0  ;;  %v432_v46 = vpack.c.bf16 %v212_v45, %v211_v44  ;;  %v303_v52 = vld [vmem:[%s595_s6] ss:$0 sm:$0xff] }
   0xd   :  { %406 = vmatpush3.bf16.msra.mxu1 %v405_v14 }
   0xe   :  { %407 = vmatprep.subr.bf16.mxu1 %v437_v0  ;;  %427 = vmatpush3.bf16.msra.mxu0 %v426_v35 }
   0xf   :  { %428 = vmatprep.subr.bf16.mxu0 %v437_v0 }
  0x11   :  { %409 = vmatpush3.bf16.msra.mxu1 %v408_v17 }
  0x12   :  { %410 = vmatprep.subr.bf16.mxu1 %v437_v0  ;;  %430 = vmatpush3.bf16.msra.mxu0 %v429_v38 }
  0x13   :  { %431 = vmatprep.subr.bf16.mxu0 %v437_v0 }
  0x15   :  { %412 = vmatpush3.bf16.msra.mxu1 %v411_v20 }
  0x16   :  { %413 = vmatprep.subr.bf16.mxu1 %v437_v0  ;;  %433 = vmatpush3.bf16.msra.mxu0 %v432_v46 }
  0x19   :  { %415 = vmatpush3.bf16.msra.mxu1 %v414_v23 }
  0x1a   :  { %416 = vmatprep.subr.bf16.mxu1 %v437_v0 }
  0x1d   :  { %418 = vmatpush3.bf16.msra.mxu1 %v417_v26 }
  0x1e   :  { %419 = vmatprep.subr.bf16.mxu1 %v437_v0 }
  0x21   :  { %421 = vmatpush3.bf16.msra.mxu1 %v420_v29 }
  0xda   :  { %v106_v40 = vpop.f32.mrb[0].mxu0 }
  0xdb   :  { %v107_v41 = vadd.f32 %v300_v39, %v106_v40  ;;  %v340_v42 = vpop.f32.mrb[1].mxu0 }
  0xdd   :  { %v110_v43 = vmax.f32 %v107_v41, 0.0 }
  0xdf   :  { %374 = vmatmul.mubr.f32.vlgmr.msra.gmra.mrb[0].mxu1 %v110_v43 }
 0x1b2   :  { %v200_v48 = vpop.f32.mrb[0].mxu1 }
 0x1b3   :  { %v201_v49 = vadd.f32 %v302_v47, %v200_v48  ;;  %v375_v50 = vpop.f32.mrb[1].mxu1 }
 0x1b5   :  { %v204_v51 = vmax.f32 %v201_v49, 0.0 }
 0x1b7   :  { %393 = vmatmul.mubr.msk.f32.vlgmr.msra.gmra.mrb[2].mxu0 %vm220_vm2, %v204_v51 }
 0x28a   :  { %v290_v53 = vpop.f32.mrb[2].mxu0 }
 0x28b   :  { %v291_v54 = vadd.f32 %v303_v52, %v290_v53  ;;  %v394_v55 = vpop.f32.mrb[3].mxu0 }
 0x28d   :  { %295 = vst.msk [vmem:[%s596_s7] sm:$0xff] %vm294_vm3, %v291_v54 }

</bundles_post_ra>
